<compile_context>
chip_gen: v7x
topology: tpu7x:2x2x1
jax: 0.10.0
libtpu: 0.0.40
codegen_flags: <defaults>
</compile_context>

<pallas_src>
import math
import functools

import jax
import jax.numpy as jnp
from jax import lax
from jax.experimental import pallas as pl
from jax.experimental.pallas import tpu as pltpu


def _erf(x):
    # Abramowitz & Stegun 7.1.26 (|err| < 1.5e-7).  The divide goes to the EUP via
    # pl.reciprocal(approx=True) instead of burning saturated VALU slots.
    a1, a2, a3, a4, a5 = 0.254829592, -0.284496736, 1.421413741, -1.453152027, 1.061405429
    p = 0.3275911
    sign = jnp.where(x >= 0.0, 1.0, -1.0)
    ax = jnp.abs(x)
    t = pl.reciprocal(1.0 + p * ax, approx=True)
    poly = ((((a5 * t + a4) * t + a3) * t + a2) * t + a1) * t
    return sign * (1.0 - poly * jnp.exp(-ax * ax))


def _axis_stencil(c, n_bins, stddev, inv_std, ext_bin, inv_sqrt2):
    """Truncated-Gaussian bin-integral stencil, shape [n_bins, tile_n] (bins on sublanes)."""
    f32 = jnp.float32
    t = c.shape[1]
    k = inv_sqrt2 * inv_std
    b = lax.broadcasted_iota(jnp.int32, (n_bins, t), 0).astype(f32)
    # erf once per bin edge: lower edges 0..n_bins-1 plus the single top edge.
    e_lo = _erf((b * stddev - c) * k)                               # [n_bins, t]
    e_top = _erf((float(n_bins) * stddev - c) * k)                  # [1, t]
    # e_hi[b] = e_lo[b + 1]: off-by-one sublane shift done as a tiny permutation matmul
    # on the (idle) MXU — unambiguous semantics, no cross-sublane relayout.
    ri = lax.broadcasted_iota(jnp.int32, (n_bins, n_bins), 0)
    ci = lax.broadcasted_iota(jnp.int32, (n_bins, n_bins), 1)
    shift_up = (ci == ri + 1).astype(f32)
    e_hi = lax.dot_general(shift_up, e_lo, (((1,), (0,)), ((), ())),
                           preferred_element_type=f32)
    e_hi = jnp.where(b == float(n_bins - 1), e_top, e_hi)           # fix the (empty) last row
    g = 0.5 * (e_hi - e_lo)
    bin_c = jnp.clip(jnp.floor(c * inv_std), 0.0, float(n_bins - 1))
    return jnp.where(jnp.abs(b - bin_c) <= float(ext_bin), g, 0.0)  # truncation window


def _demand_kernel(feats_ref, area_ref, dem_ref, *,
                   num_bins_x, num_bins_y, num_bins_l,
                   stddev_x, stddev_y, inv_sx, inv_sy,
                   ext_bin, area_scale, inv_sqrt2):
    f32 = jnp.float32
    pid = pl.program_id(0)

    @pl.when(pid == 0)
    def _init():
        dem_ref[...] = jnp.zeros_like(dem_ref)

    feats = feats_ref[...].astype(f32)          # [3, TILE_N]: rows = (cx, cy, lut_type)
    cx = feats[0:1, :]
    cy = feats[1:2, :]
    lt = feats[2:3, :]

    # LUT-pairing groups via direct compares (no [N, num_bins_l] one-hot materialization).
    valid = jnp.where((lt >= 0.0) & (lt < float(num_bins_l)), 1.0, 0.0)   # pad rows carry lt = -1
    w_small = jnp.where((lt >= 0.0) & (lt <= 1.0), 1.0, 0.0)              # LUT1/2
    w_mid = jnp.where((lt >= 2.0) & (lt <= 3.0), 1.0, 0.0)                # LUT3/4 (pair w/ small only)
    w_big = valid - w_small - w_mid                                       # LUT5/6 (no pairing)

    gx = _axis_stencil(cx, num_bins_x, stddev_x, inv_sx, ext_bin, inv_sqrt2)   # [NBX, TILE_N]
    gy = _axis_stencil(cy, num_bins_y, stddev_y, inv_sy, ext_bin, inv_sqrt2)   # [NBY, TILE_N]

    # One fused MXU contraction for all three group demand maps -> [3*NBX, NBY].
    lhs = jnp.concatenate([gx * w_small, gx * w_mid, gx * w_big], axis=0)
    dem_ref[...] += lax.dot_general(lhs, gy, (((1,), (1,)), ((), ())),
                                    preferred_element_type=f32)

    @pl.when(pid == pl.num_programs(0) - 1)
    def _finalize():
        nbx = num_bins_x
        d_small = dem_ref[0:nbx, :]
        d_mid = dem_ref[nbx:2 * nbx, :]
        d_big = dem_ref[2 * nbx:3 * nbx, :]
        d_total = d_small + d_mid + d_big
        # required LUT6 half-slots: everything + unpairable LUT5/6 + LUT3/4 excess over LUT1/2
        half_slots = d_total + d_big + jnp.maximum(d_mid - d_small, 0.0)
        inv_total = pl.reciprocal(jnp.maximum(d_total, 1e-12), approx=True)
        # bin_area and the final /16 (16 LUT slots per SLICE) are folded into this tiny map.
        area_ref[...] = (area_scale * half_slots * inv_total).astype(area_ref.dtype)


def _gather_kernel(area_ref, feats_ref, out_ref, *,
                   num_bins_x, num_bins_y, num_bins_l, inv_sx, inv_sy):
    f32 = jnp.float32
    t = feats_ref.shape[1]
    feats = feats_ref[...].astype(f32)
    cx = feats[0:1, :]
    cy = feats[1:2, :]
    lt = feats[2:3, :]

    valid = jnp.where((lt >= 0.0) & (lt < float(num_bins_l)), 1.0, 0.0)
    binx = jnp.clip(jnp.floor(cx * inv_sx), 0.0, float(num_bins_x - 1))   # clamped bin index
    biny = jnp.clip(jnp.floor(cy * inv_sy), 0.0, float(num_bins_y - 1))

    bxi = lax.broadcasted_iota(jnp.int32, (num_bins_x, t), 0).astype(f32)
    byi = lax.broadcasted_iota(jnp.int32, (num_bins_y, t), 0).astype(f32)
    oh_bx = jnp.where(bxi == binx, valid, 0.0)      # [NBX, TILE_N], pad rows masked out
    oh_by = jnp.where(byi == biny, 1.0, 0.0)        # [NBY, TILE_N]

    area = area_ref[...].astype(f32)                # [NBX, NBY]
    tmp = lax.dot_general(area, oh_bx, (((0,), (0,)), ((), ())),
                          preferred_element_type=f32)               # [NBY, TILE_N]
    inst = jnp.sum(tmp * oh_by, axis=0, keepdims=True)              # [1, TILE_N]
    out_ref[...] = inst.astype(out_ref.dtype)


def _pick_tile_n(num_bins_x, num_bins_y, num_lut):
    """Largest lane tile keeping the per-tile VMEM working set conservative.

    Live f32 rows per instance lane (stencils + edge-erf temps + fused LHS + double-buffered
    inputs) ~= 8*NBX + 5*NBY + 32.  A ~12 MiB budget leaves ample headroom under v7x's
    64 MiB VMEM (32 MiB default scoped window) as well as v5e/v6e's 128 MiB.
    """
    rows = 8 * num_bins_x + 5 * num_bins_y + 32
    tile = (12 * 1024 * 1024) // (rows * 4)
    tile = max(128, min(2048, (tile // 128) * 128))
    tile = min(tile, max(128, ((num_lut + 127) // 128) * 128))   # don't overshoot tiny problems
    return int(tile)


class LUTCompatibilityPallas:
    """JAX/Pallas re-implementation of dreamplacefpga LUTCompatibility.forward."""

    def __init__(self, lut_indices, lut_type, node_size_x, node_size_y,
                 num_bins_x, num_bins_y, num_bins_l,
                 xl, yl, xh, yh,
                 inst_stddev_x, inst_stddev_y, inst_stddev_trunc,
                 deterministic_flag=True, num_threads=1):
        self.lut_indices = lut_indices
        self.lut_type = lut_type
        self.node_size_x = node_size_x
        self.node_size_y = node_size_y
        self.num_bins_x = int(num_bins_x)
        self.num_bins_y = int(num_bins_y)
        self.num_bins_l = int(num_bins_l)
        self.xl, self.yl, self.xh, self.yh = float(xl), float(yl), float(xh), float(yh)
        self.inst_stddev_x = float(inst_stddev_x)
        self.inst_stddev_y = float(inst_stddev_y)
        self.inst_stddev_trunc = float(inst_stddev_trunc)
        self.deterministic_flag = deterministic_flag   # dense reduction is already deterministic
        self.num_threads = num_threads                 # unused on TPU
        self.ext_bin = max(int(round(self.inst_stddev_trunc - 0.5)), 0)

    def __call__(self, pos):
        num_nodes = self.node_size_x.shape[0]
        num_lut = int(self.lut_indices.shape[0])
        if num_lut == 0:
            return jnp.zeros(num_nodes, dtype=pos.dtype)

        nbx, nby, nbl = self.num_bins_x, self.num_bins_y, self.num_bins_l
        inv_sx = 1.0 / self.inst_stddev_x
        inv_sy = 1.0 / self.inst_stddev_y
        inv_sqrt2 = 1.0 / math.sqrt(2.0)

        pos_x = pos[:num_nodes]
        pos_y = pos[num_nodes:]
        idx = self.lut_indices

        # glue: per-instance gather + centering in plain JAX, packed into one lane-dense
        # f32 slab [3, NPAD] (rows = cx, cy, lut_type; instances on the lane axis).
        cx = (pos_x[idx] + 0.5 * self.node_size_x[idx] - self.xl).astype(jnp.float32)
        cy = (pos_y[idx] + 0.5 * self.node_size_y[idx] - self.yl).astype(jnp.float32)
        lt = self.lut_type[idx].astype(jnp.float32)

        tile_n = _pick_tile_n(nbx, nby, num_lut)
        npad = ((num_lut + tile_n - 1) // tile_n) * tile_n
        pad = npad - num_lut
        num_tiles = npad // tile_n
        feats = jnp.stack([jnp.pad(cx, (0, pad)),
                           jnp.pad(cy, (0, pad)),
                           jnp.pad(lt, (0, pad), constant_values=-1.0)], axis=0)

        demand_kernel = functools.partial(
            _demand_kernel,
            num_bins_x=nbx, num_bins_y=nby, num_bins_l=nbl,
            stddev_x=self.inst_stddev_x, stddev_y=self.inst_stddev_y,
            inv_sx=inv_sx, inv_sy=inv_sy, ext_bin=self.ext_bin,
            area_scale=self.inst_stddev_x * self.inst_stddev_y / 16.0,
            inv_sqrt2=inv_sqrt2)

        area_map = pl.pallas_call(
            demand_kernel,
            grid=(num_tiles,),
            in_specs=[pl.BlockSpec((3, tile_n), lambda i: (0, i))],
            out_specs=pl.BlockSpec((nbx, nby), lambda i: (0, 0)),
            out_shape=jax.ShapeDtypeStruct((nbx, nby), jnp.float32),
            scratch_shapes=[pltpu.VMEM((3 * nbx, nby), jnp.float32)],
            compiler_params=pltpu.CompilerParams(dimension_semantics=("arbitrary",)),
            cost_estimate=pl.CostEstimate(
                flops=2 * npad * (3 * nbx * nby + nbx * nbx + nby * nby)
                      + 80 * npad * (nbx + nby),
                transcendentals=npad * (nbx + nby + 2),
                bytes_accessed=3 * npad * 4 + nbx * nby * 4),
        )(feats)

        gather_kernel = functools.partial(
            _gather_kernel,
            num_bins_x=nbx, num_bins_y=nby, num_bins_l=nbl,
            inv_sx=inv_sx, inv_sy=inv_sy)

        inst_area = pl.pallas_call(
            gather_kernel,
            grid=(num_tiles,),
            in_specs=[pl.BlockSpec((nbx, nby), lambda i: (0, 0)),
                      pl.BlockSpec((3, tile_n), lambda i: (0, i))],
            out_specs=pl.BlockSpec((1, tile_n), lambda i: (0, i)),
            out_shape=jax.ShapeDtypeStruct((1, npad), pos.dtype),
            compiler_params=pltpu.CompilerParams(dimension_semantics=("parallel",)),
            cost_estimate=pl.CostEstimate(
                flops=2 * npad * nbx * nby + 12 * npad * (nbx + nby),
                transcendentals=0,
                bytes_accessed=3 * npad * 4 + nbx * nby * 4 + npad * pos.dtype.itemsize),
        )(area_map, feats)

        # glue: scatter per-instance areas back to the full node array
        resource_areas = jnp.zeros(num_nodes, dtype=pos.dtype)
        resource_areas = resource_areas.at[idx].set(inst_area[0, :num_lut])
        return resource_areas


if __name__ == "__main__":
    key = jax.random.PRNGKey(0)
    num_nodes = 64
    num_lut = 37
    num_bins_x = num_bins_y = 16
    num_bins_l = 8
    xl, yl, xh, yh = 0.0, 0.0, 16.0, 16.0
    inst_stddev_x = inst_stddev_y = 1.0
    inst_stddev_trunc = 2.5

    k1, k2, k3, k4 = jax.random.split(key, 4)
    pos_x = jax.random.uniform(k1, (num_nodes,), jnp.float32, 0.5, xh - 1.5)
    pos_y = jax.random.uniform(k2, (num_nodes,), jnp.float32, 0.5, yh - 1.5)
    pos = jnp.concatenate([pos_x, pos_y])               # flat [2*num_nodes] = [x coords | y coords]
    node_size_x = jnp.full((num_nodes,), 0.5, jnp.float32)
    node_size_y = jnp.full((num_nodes,), 0.5, jnp.float32)
    lut_type = jax.random.randint(k3, (num_nodes,), 0, 6).astype(jnp.int32)
    lut_indices = jnp.sort(jax.random.permutation(k4, num_nodes)[:num_lut]).astype(jnp.int32)

    mod = LUTCompatibilityPallas(
        lut_indices, lut_type, node_size_x, node_size_y,
        num_bins_x, num_bins_y, num_bins_l,
        xl, yl, xh, yh,
        inst_stddev_x, inst_stddev_y, inst_stddev_trunc,
        deterministic_flag=True, num_threads=8,
    )

    resource_areas = jax.block_until_ready(mod(pos))

    assert resource_areas.shape == (num_nodes,)
    assert resource_areas.dtype == jnp.float32
    assert bool(jnp.all(jnp.isfinite(resource_areas)))
    # LUT nodes must receive a positive area, non-LUT nodes stay at zero
    assert bool(jnp.all(resource_areas[lut_indices] > 0.0))
    lut_mask = jnp.zeros(num_nodes, bool).at[lut_indices].set(True)
    assert bool(jnp.all(jnp.where(lut_mask, True, resource_areas == 0.0)))
    print("KERNEL_OK")
</pallas_src>

<mosaic_0001>
module attributes {stable_mosaic.version = 11 : i64} {
  func.func @_demand_kernel(%arg0: i32, %arg1: memref<3x128xf32, #tpu.memory_space<vmem>>, %arg2: memref<16x16xf32, #tpu.memory_space<vmem>>, %arg3: memref<48x16xf32, #tpu.memory_space<vmem>>) attributes {dimension_semantics = [#tpu.dimension_semantics<arbitrary>], iteration_bounds = array<i64: 1>, scalar_prefetch = 0 : i64, scratch_operands = 1 : i64, tpu.core_type = #tpu.core_type<tc>, window_params = [{transform_indices = @transform_0, window_bounds = array<i64: 3, 128>}, {pipeline_mode = #tpu.pipeline_mode<synchronous>, transform_indices = @transform_1, window_bounds = array<i64: 16, 16>}]} {
    %c0_i32 = arith.constant 0 : i32
    %0 = arith.cmpi eq, %arg0, %c0_i32 : i32
    %1 = arith.extui %0 : i1 to i32
    %c0_i32_0 = arith.constant 0 : i32
    %2 = arith.cmpi ne, %1, %c0_i32_0 : i32
    scf.if %2 {
      %cst_93 = arith.constant 0.000000e+00 : f32
      %263 = vector.broadcast %cst_93 : f32 to vector<48x16xf32>
      %c0_94 = arith.constant 0 : index
      %c0_95 = arith.constant 0 : index
      %264 = vector.load %arg3[%c0_94, %c0_95] : memref<48x16xf32, #tpu.memory_space<vmem>>, vector<48x16xf32>
      tpu.vector_store %arg3[%c0_94, %c0_95], %263 {strides = array<i32>} : memref<48x16xf32, #tpu.memory_space<vmem>>, vector<48x16xf32>,
    } else {
    }
    %c0 = arith.constant 0 : index
    %c0_1 = arith.constant 0 : index
    %3 = vector.load %arg1[%c0, %c0_1] : memref<3x128xf32, #tpu.memory_space<vmem>>, vector<3x128xf32>
    %4 = vector.extract_strided_slice %3 {offsets = [0, 0], sizes = [1, 128], strides = [1, 1]} : vector<3x128xf32> to vector<1x128xf32>
    %5 = vector.extract_strided_slice %3 {offsets = [1, 0], sizes = [1, 128], strides = [1, 1]} : vector<3x128xf32> to vector<1x128xf32>
    %6 = vector.extract_strided_slice %3 {offsets = [2, 0], sizes = [1, 128], strides = [1, 1]} : vector<3x128xf32> to vector<1x128xf32>
    %cst = arith.constant 0.000000e+00 : f32
    %7 = vector.broadcast %cst : f32 to vector<1x128xf32>
    %8 = arith.cmpf oge, %6, %7 : vector<1x128xf32>
    %cst_2 = arith.constant 8.000000e+00 : f32
    %9 = vector.broadcast %cst_2 : f32 to vector<1x128xf32>
    %10 = arith.cmpf olt, %6, %9 : vector<1x128xf32>
    %11 = arith.andi %8, %10 : vector<1x128xi1>
    %cst_3 = arith.constant 1.000000e+00 : f32
    %cst_4 = arith.constant 0.000000e+00 : f32
    %12 = vector.broadcast %cst_3 : f32 to vector<1x128xf32>
    %13 = vector.broadcast %cst_4 : f32 to vector<1x128xf32>
    %14 = arith.select %11, %12, %13 : vector<1x128xi1>, vector<1x128xf32>
    %cst_5 = arith.constant 0.000000e+00 : f32
    %15 = vector.broadcast %cst_5 : f32 to vector<1x128xf32>
    %16 = arith.cmpf oge, %6, %15 : vector<1x128xf32>
    %cst_6 = arith.constant 1.000000e+00 : f32
    %17 = vector.broadcast %cst_6 : f32 to vector<1x128xf32>
    %18 = arith.cmpf ole, %6, %17 : vector<1x128xf32>
    %19 = arith.andi %16, %18 : vector<1x128xi1>
    %cst_7 = arith.constant 1.000000e+00 : f32
    %cst_8 = arith.constant 0.000000e+00 : f32
    %20 = vector.broadcast %cst_7 : f32 to vector<1x128xf32>
    %21 = vector.broadcast %cst_8 : f32 to vector<1x128xf32>
    %22 = arith.select %19, %20, %21 : vector<1x128xi1>, vector<1x128xf32>
    %cst_9 = arith.constant 2.000000e+00 : f32
    %23 = vector.broadcast %cst_9 : f32 to vector<1x128xf32>
    %24 = arith.cmpf oge, %6, %23 : vector<1x128xf32>
    %cst_10 = arith.constant 3.000000e+00 : f32
    %25 = vector.broadcast %cst_10 : f32 to vector<1x128xf32>
    %26 = arith.cmpf ole, %6, %25 : vector<1x128xf32>
    %27 = arith.andi %24, %26 : vector<1x128xi1>
    %cst_11 = arith.constant 1.000000e+00 : f32
    %cst_12 = arith.constant 0.000000e+00 : f32
    %28 = vector.broadcast %cst_11 : f32 to vector<1x128xf32>
    %29 = vector.broadcast %cst_12 : f32 to vector<1x128xf32>
    %30 = arith.select %27, %28, %29 : vector<1x128xi1>, vector<1x128xf32>
    %31 = arith.subf %14, %22 : vector<1x128xf32>
    %32 = arith.subf %31, %30 : vector<1x128xf32>
    %33 = tpu.iota {dimensions = array<i32: 0>} : vector<16x128xi32>
    %34 = arith.sitofp %33 : vector<16x128xi32> to vector<16x128xf32>
    %cst_13 = arith.constant 1.000000e+00 : f32
    %35 = vector.broadcast %cst_13 : f32 to vector<16x128xf32>
    %36 = arith.mulf %34, %35 : vector<16x128xf32>
    %37 = vector.broadcast %4 : vector<1x128xf32> to vector<16x128xf32>
    %38 = arith.subf %36, %37 : vector<16x128xf32>
    %cst_14 = arith.constant 0.707106769 : f32
    %39 = vector.broadcast %cst_14 : f32 to vector<16x128xf32>
    %40 = arith.mulf %38, %39 : vector<16x128xf32>
    %cst_15 = arith.constant 0.000000e+00 : f32
    %41 = vector.broadcast %cst_15 : f32 to vector<16x128xf32>
    %42 = arith.cmpf oge, %40, %41 : vector<16x128xf32>
    %cst_16 = arith.constant 1.000000e+00 : f32
    %cst_17 = arith.constant -1.000000e+00 : f32
    %43 = vector.broadcast %cst_16 : f32 to vector<16x128xf32>
    %44 = vector.broadcast %cst_17 : f32 to vector<16x128xf32>
    %45 = arith.select %42, %43, %44 : vector<16x128xi1>, vector<16x128xf32>
    %46 = math.absf %40 : vector<16x128xf32>
    %cst_18 = arith.constant 0.327591091 : f32
    %47 = vector.broadcast %cst_18 : f32 to vector<16x128xf32>
    %48 = arith.mulf %47, %46 : vector<16x128xf32>
    %cst_19 = arith.constant 1.000000e+00 : f32
    %49 = vector.broadcast %cst_19 : f32 to vector<16x128xf32>
    %50 = arith.addf %49, %48 : vector<16x128xf32>
    %51 = tpu.reciprocal %50 {approx = true} : vector<16x128xf32> -> vector<16x128xf32>
    %cst_20 = arith.constant 1.06140542 : f32
    %52 = vector.broadcast %cst_20 : f32 to vector<16x128xf32>
    %53 = arith.mulf %52, %51 : vector<16x128xf32>
    %cst_21 = arith.constant -1.45315206 : f32
    %54 = vector.broadcast %cst_21 : f32 to vector<16x128xf32>
    %55 = arith.addf %53, %54 : vector<16x128xf32>
    %56 = arith.mulf %55, %51 : vector<16x128xf32>
    %cst_22 = arith.constant 1.42141378 : f32
    %57 = vector.broadcast %cst_22 : f32 to vector<16x128xf32>
    %58 = arith.addf %56, %57 : vector<16x128xf32>
    %59 = arith.mulf %58, %51 : vector<16x128xf32>
    %cst_23 = arith.constant -0.284496725 : f32
    %60 = vector.broadcast %cst_23 : f32 to vector<16x128xf32>
    %61 = arith.addf %59, %60 : vector<16x128xf32>
    %62 = arith.mulf %61, %51 : vector<16x128xf32>
    %cst_24 = arith.constant 0.254829586 : f32
    %63 = vector.broadcast %cst_24 : f32 to vector<16x128xf32>
    %64 = arith.addf %62, %63 : vector<16x128xf32>
    %65 = arith.mulf %64, %51 : vector<16x128xf32>
    %cst_25 = arith.constant 0.000000e+00 : f32
    %66 = vector.broadcast %cst_25 : f32 to vector<16x128xf32>
    %67 = arith.subf %66, %46 : vector<16x128xf32>
    %68 = arith.mulf %67, %46 : vector<16x128xf32>
    %69 = math.exp %68 : vector<16x128xf32>
    %70 = arith.mulf %65, %69 : vector<16x128xf32>
    %cst_26 = arith.constant 1.000000e+00 : f32
    %71 = vector.broadcast %cst_26 : f32 to vector<16x128xf32>
    %72 = arith.subf %71, %70 : vector<16x128xf32>
    %73 = arith.mulf %45, %72 : vector<16x128xf32>
    %cst_27 = arith.constant 1.600000e+01 : f32
    %74 = vector.broadcast %cst_27 : f32 to vector<1x128xf32>
    %75 = arith.subf %74, %4 : vector<1x128xf32>
    %cst_28 = arith.constant 0.707106769 : f32
    %76 = vector.broadcast %cst_28 : f32 to vector<1x128xf32>
    %77 = arith.mulf %75, %76 : vector<1x128xf32>
    %cst_29 = arith.constant 0.000000e+00 : f32
    %78 = vector.broadcast %cst_29 : f32 to vector<1x128xf32>
    %79 = arith.cmpf oge, %77, %78 : vector<1x128xf32>
    %cst_30 = arith.constant 1.000000e+00 : f32
    %cst_31 = arith.constant -1.000000e+00 : f32
    %80 = vector.broadcast %cst_30 : f32 to vector<1x128xf32>
    %81 = vector.broadcast %cst_31 : f32 to vector<1x128xf32>
    %82 = arith.select %79, %80, %81 : vector<1x128xi1>, vector<1x128xf32>
    %83 = math.absf %77 : vector<1x128xf32>
    %cst_32 = arith.constant 0.327591091 : f32
    %84 = vector.broadcast %cst_32 : f32 to vector<1x128xf32>
    %85 = arith.mulf %84, %83 : vector<1x128xf32>
    %cst_33 = arith.constant 1.000000e+00 : f32
    %86 = vector.broadcast %cst_33 : f32 to vector<1x128xf32>
    %87 = arith.addf %86, %85 : vector<1x128xf32>
    %88 = tpu.reciprocal %87 {approx = true} : vector<1x128xf32> -> vector<1x128xf32>
    %cst_34 = arith.constant 1.06140542 : f32
    %89 = vector.broadcast %cst_34 : f32 to vector<1x128xf32>
    %90 = arith.mulf %89, %88 : vector<1x128xf32>
    %cst_35 = arith.constant -1.45315206 : f32
    %91 = vector.broadcast %cst_35 : f32 to vector<1x128xf32>
    %92 = arith.addf %90, %91 : vector<1x128xf32>
    %93 = arith.mulf %92, %88 : vector<1x128xf32>
    %cst_36 = arith.constant 1.42141378 : f32
    %94 = vector.broadcast %cst_36 : f32 to vector<1x128xf32>
    %95 = arith.addf %93, %94 : vector<1x128xf32>
    %96 = arith.mulf %95, %88 : vector<1x128xf32>
    %cst_37 = arith.constant -0.284496725 : f32
    %97 = vector.broadcast %cst_37 : f32 to vector<1x128xf32>
    %98 = arith.addf %96, %97 : vector<1x128xf32>
    %99 = arith.mulf %98, %88 : vector<1x128xf32>
    %cst_38 = arith.constant 0.254829586 : f32
    %100 = vector.broadcast %cst_38 : f32 to vector<1x128xf32>
    %101 = arith.addf %99, %100 : vector<1x128xf32>
    %102 = arith.mulf %101, %88 : vector<1x128xf32>
    %cst_39 = arith.constant 0.000000e+00 : f32
    %103 = vector.broadcast %cst_39 : f32 to vector<1x128xf32>
    %104 = arith.subf %103, %83 : vector<1x128xf32>
    %105 = arith.mulf %104, %83 : vector<1x128xf32>
    %106 = math.exp %105 : vector<1x128xf32>
    %107 = arith.mulf %102, %106 : vector<1x128xf32>
    %cst_40 = arith.constant 1.000000e+00 : f32
    %108 = vector.broadcast %cst_40 : f32 to vector<1x128xf32>
    %109 = arith.subf %108, %107 : vector<1x128xf32>
    %110 = arith.mulf %82, %109 : vector<1x128xf32>
    %111 = tpu.iota {dimensions = array<i32: 0>} : vector<16x16xi32>
    %112 = tpu.iota {dimensions = array<i32: 1>} : vector<16x16xi32>
    %c1_i32 = arith.constant 1 : i32
    %113 = vector.broadcast %c1_i32 : i32 to vector<16x16xi32>
    %114 = arith.addi %111, %113 : vector<16x16xi32>
    %115 = arith.cmpi eq, %112, %114 : vector<16x16xi32>
    %116 = arith.extui %115 : vector<16x16xi1> to vector<16x16xi32>
    %117 = arith.sitofp %116 : vector<16x16xi32> to vector<16x16xf32>
    %cst_41 = arith.constant dense<0.000000e+00> : vector<16x128xf32>
    %118 = tpu.matmul %117, %73, %cst_41 {dimension_numbers = #tpu.dot_dimension_numbers<[1], [0], [0], [1], [0, 0, 1, 1], [], []>} : vector<16x16xf32>, vector<16x128xf32>, vector<16x128xf32> -> vector<16x128xf32>
    %cst_42 = arith.constant 1.500000e+01 : f32
    %119 = vector.broadcast %cst_42 : f32 to vector<16x128xf32>
    %120 = arith.cmpf oeq, %34, %119 : vector<16x128xf32>
    %121 = vector.shape_cast %110 : vector<1x128xf32> to vector<1x128xf32>
    %122 = vector.broadcast %121 : vector<1x128xf32> to vector<16x128xf32>
    %123 = arith.select %120, %122, %118 : vector<16x128xi1>, vector<16x128xf32>
    %124 = arith.subf %123, %73 : vector<16x128xf32>
    %cst_43 = arith.constant 5.000000e-01 : f32
    %125 = vector.broadcast %cst_43 : f32 to vector<16x128xf32>
    %126 = arith.mulf %125, %124 : vector<16x128xf32>
    %cst_44 = arith.constant 1.000000e+00 : f32
    %127 = vector.broadcast %cst_44 : f32 to vector<1x128xf32>
    %128 = arith.mulf %4, %127 : vector<1x128xf32>
    %129 = math.floor %128 : vector<1x128xf32>
    %cst_45 = arith.constant 0.000000e+00 : f32
    %cst_46 = arith.constant 1.500000e+01 : f32
    %130 = vector.broadcast %cst_45 : f32 to vector<1x128xf32>
    %131 = arith.maximumf %130, %129 : vector<1x128xf32>
    %132 = vector.broadcast %cst_46 : f32 to vector<1x128xf32>
    %133 = arith.minimumf %132, %131 : vector<1x128xf32>
    %134 = vector.broadcast %133 : vector<1x128xf32> to vector<16x128xf32>
    %135 = arith.subf %34, %134 : vector<16x128xf32>
    %136 = math.absf %135 : vector<16x128xf32>
    %cst_47 = arith.constant 2.000000e+00 : f32
    %137 = vector.broadcast %cst_47 : f32 to vector<16x128xf32>
    %138 = arith.cmpf ole, %136, %137 : vector<16x128xf32>
    %cst_48 = arith.constant 0.000000e+00 : f32
    %139 = vector.broadcast %cst_48 : f32 to vector<16x128xf32>
    %140 = arith.select %138, %126, %139 : vector<16x128xi1>, vector<16x128xf32>
    %141 = tpu.iota {dimensions = array<i32: 0>} : vector<16x128xi32>
    %142 = arith.sitofp %141 : vector<16x128xi32> to vector<16x128xf32>
    %cst_49 = arith.constant 1.000000e+00 : f32
    %143 = vector.broadcast %cst_49 : f32 to vector<16x128xf32>
    %144 = arith.mulf %142, %143 : vector<16x128xf32>
    %145 = vector.broadcast %5 : vector<1x128xf32> to vector<16x128xf32>
    %146 = arith.subf %144, %145 : vector<16x128xf32>
    %cst_50 = arith.constant 0.707106769 : f32
    %147 = vector.broadcast %cst_50 : f32 to vector<16x128xf32>
    %148 = arith.mulf %146, %147 : vector<16x128xf32>
    %cst_51 = arith.constant 0.000000e+00 : f32
    %149 = vector.broadcast %cst_51 : f32 to vector<16x128xf32>
    %150 = arith.cmpf oge, %148, %149 : vector<16x128xf32>
    %cst_52 = arith.constant 1.000000e+00 : f32
    %cst_53 = arith.constant -1.000000e+00 : f32
    %151 = vector.broadcast %cst_52 : f32 to vector<16x128xf32>
    %152 = vector.broadcast %cst_53 : f32 to vector<16x128xf32>
    %153 = arith.select %150, %151, %152 : vector<16x128xi1>, vector<16x128xf32>
    %154 = math.absf %148 : vector<16x128xf32>
    %cst_54 = arith.constant 0.327591091 : f32
    %155 = vector.broadcast %cst_54 : f32 to vector<16x128xf32>
    %156 = arith.mulf %155, %154 : vector<16x128xf32>
    %cst_55 = arith.constant 1.000000e+00 : f32
    %157 = vector.broadcast %cst_55 : f32 to vector<16x128xf32>
    %158 = arith.addf %157, %156 : vector<16x128xf32>
    %159 = tpu.reciprocal %158 {approx = true} : vector<16x128xf32> -> vector<16x128xf32>
    %cst_56 = arith.constant 1.06140542 : f32
    %160 = vector.broadcast %cst_56 : f32 to vector<16x128xf32>
    %161 = arith.mulf %160, %159 : vector<16x128xf32>
    %cst_57 = arith.constant -1.45315206 : f32
    %162 = vector.broadcast %cst_57 : f32 to vector<16x128xf32>
    %163 = arith.addf %161, %162 : vector<16x128xf32>
    %164 = arith.mulf %163, %159 : vector<16x128xf32>
    %cst_58 = arith.constant 1.42141378 : f32
    %165 = vector.broadcast %cst_58 : f32 to vector<16x128xf32>
    %166 = arith.addf %164, %165 : vector<16x128xf32>
    %167 = arith.mulf %166, %159 : vector<16x128xf32>
    %cst_59 = arith.constant -0.284496725 : f32
    %168 = vector.broadcast %cst_59 : f32 to vector<16x128xf32>
    %169 = arith.addf %167, %168 : vector<16x128xf32>
    %170 = arith.mulf %169, %159 : vector<16x128xf32>
    %cst_60 = arith.constant 0.254829586 : f32
    %171 = vector.broadcast %cst_60 : f32 to vector<16x128xf32>
    %172 = arith.addf %170, %171 : vector<16x128xf32>
    %173 = arith.mulf %172, %159 : vector<16x128xf32>
    %cst_61 = arith.constant 0.000000e+00 : f32
    %174 = vector.broadcast %cst_61 : f32 to vector<16x128xf32>
    %175 = arith.subf %174, %154 : vector<16x128xf32>
    %176 = arith.mulf %175, %154 : vector<16x128xf32>
    %177 = math.exp %176 : vector<16x128xf32>
    %178 = arith.mulf %173, %177 : vector<16x128xf32>
    %cst_62 = arith.constant 1.000000e+00 : f32
    %179 = vector.broadcast %cst_62 : f32 to vector<16x128xf32>
    %180 = arith.subf %179, %178 : vector<16x128xf32>
    %181 = arith.mulf %153, %180 : vector<16x128xf32>
    %cst_63 = arith.constant 1.600000e+01 : f32
    %182 = vector.broadcast %cst_63 : f32 to vector<1x128xf32>
    %183 = arith.subf %182, %5 : vector<1x128xf32>
    %cst_64 = arith.constant 0.707106769 : f32
    %184 = vector.broadcast %cst_64 : f32 to vector<1x128xf32>
    %185 = arith.mulf %183, %184 : vector<1x128xf32>
    %cst_65 = arith.constant 0.000000e+00 : f32
    %186 = vector.broadcast %cst_65 : f32 to vector<1x128xf32>
    %187 = arith.cmpf oge, %185, %186 : vector<1x128xf32>
    %cst_66 = arith.constant 1.000000e+00 : f32
    %cst_67 = arith.constant -1.000000e+00 : f32
    %188 = vector.broadcast %cst_66 : f32 to vector<1x128xf32>
    %189 = vector.broadcast %cst_67 : f32 to vector<1x128xf32>
    %190 = arith.select %187, %188, %189 : vector<1x128xi1>, vector<1x128xf32>
    %191 = math.absf %185 : vector<1x128xf32>
    %cst_68 = arith.constant 0.327591091 : f32
    %192 = vector.broadcast %cst_68 : f32 to vector<1x128xf32>
    %193 = arith.mulf %192, %191 : vector<1x128xf32>
    %cst_69 = arith.constant 1.000000e+00 : f32
    %194 = vector.broadcast %cst_69 : f32 to vector<1x128xf32>
    %195 = arith.addf %194, %193 : vector<1x128xf32>
    %196 = tpu.reciprocal %195 {approx = true} : vector<1x128xf32> -> vector<1x128xf32>
    %cst_70 = arith.constant 1.06140542 : f32
    %197 = vector.broadcast %cst_70 : f32 to vector<1x128xf32>
    %198 = arith.mulf %197, %196 : vector<1x128xf32>
    %cst_71 = arith.constant -1.45315206 : f32
    %199 = vector.broadcast %cst_71 : f32 to vector<1x128xf32>
    %200 = arith.addf %198, %199 : vector<1x128xf32>
    %201 = arith.mulf %200, %196 : vector<1x128xf32>
    %cst_72 = arith.constant 1.42141378 : f32
    %202 = vector.broadcast %cst_72 : f32 to vector<1x128xf32>
    %203 = arith.addf %201, %202 : vector<1x128xf32>
    %204 = arith.mulf %203, %196 : vector<1x128xf32>
    %cst_73 = arith.constant -0.284496725 : f32
    %205 = vector.broadcast %cst_73 : f32 to vector<1x128xf32>
    %206 = arith.addf %204, %205 : vector<1x128xf32>
    %207 = arith.mulf %206, %196 : vector<1x128xf32>
    %cst_74 = arith.constant 0.254829586 : f32
    %208 = vector.broadcast %cst_74 : f32 to vector<1x128xf32>
    %209 = arith.addf %207, %208 : vector<1x128xf32>
    %210 = arith.mulf %209, %196 : vector<1x128xf32>
    %cst_75 = arith.constant 0.000000e+00 : f32
    %211 = vector.broadcast %cst_75 : f32 to vector<1x128xf32>
    %212 = arith.subf %211, %191 : vector<1x128xf32>
    %213 = arith.mulf %212, %191 : vector<1x128xf32>
    %214 = math.exp %213 : vector<1x128xf32>
    %215 = arith.mulf %210, %214 : vector<1x128xf32>
    %cst_76 = arith.constant 1.000000e+00 : f32
    %216 = vector.broadcast %cst_76 : f32 to vector<1x128xf32>
    %217 = arith.subf %216, %215 : vector<1x128xf32>
    %218 = arith.mulf %190, %217 : vector<1x128xf32>
    %219 = tpu.iota {dimensions = array<i32: 0>} : vector<16x16xi32>
    %220 = tpu.iota {dimensions = array<i32: 1>} : vector<16x16xi32>
    %c1_i32_77 = arith.constant 1 : i32
    %221 = vector.broadcast %c1_i32_77 : i32 to vector<16x16xi32>
    %222 = arith.addi %219, %221 : vector<16x16xi32>
    %223 = arith.cmpi eq, %220, %222 : vector<16x16xi32>
    %224 = arith.extui %223 : vector<16x16xi1> to vector<16x16xi32>
    %225 = arith.sitofp %224 : vector<16x16xi32> to vector<16x16xf32>
    %cst_78 = arith.constant dense<0.000000e+00> : vector<16x128xf32>
    %226 = tpu.matmul %225, %181, %cst_78 {dimension_numbers = #tpu.dot_dimension_numbers<[1], [0], [0], [1], [0, 0, 1, 1], [], []>} : vector<16x16xf32>, vector<16x128xf32>, vector<16x128xf32> -> vector<16x128xf32>
    %cst_79 = arith.constant 1.500000e+01 : f32
    %227 = vector.broadcast %cst_79 : f32 to vector<16x128xf32>
    %228 = arith.cmpf oeq, %142, %227 : vector<16x128xf32>
    %229 = vector.shape_cast %218 : vector<1x128xf32> to vector<1x128xf32>
    %230 = vector.broadcast %229 : vector<1x128xf32> to vector<16x128xf32>
    %231 = arith.select %228, %230, %226 : vector<16x128xi1>, vector<16x128xf32>
    %232 = arith.subf %231, %181 : vector<16x128xf32>
    %cst_80 = arith.constant 5.000000e-01 : f32
    %233 = vector.broadcast %cst_80 : f32 to vector<16x128xf32>
    %234 = arith.mulf %233, %232 : vector<16x128xf32>
    %cst_81 = arith.constant 1.000000e+00 : f32
    %235 = vector.broadcast %cst_81 : f32 to vector<1x128xf32>
    %236 = arith.mulf %5, %235 : vector<1x128xf32>
    %237 = math.floor %236 : vector<1x128xf32>
    %cst_82 = arith.constant 0.000000e+00 : f32
    %cst_83 = arith.constant 1.500000e+01 : f32
    %238 = vector.broadcast %cst_82 : f32 to vector<1x128xf32>
    %239 = arith.maximumf %238, %237 : vector<1x128xf32>
    %240 = vector.broadcast %cst_83 : f32 to vector<1x128xf32>
    %241 = arith.minimumf %240, %239 : vector<1x128xf32>
    %242 = vector.broadcast %241 : vector<1x128xf32> to vector<16x128xf32>
    %243 = arith.subf %142, %242 : vector<16x128xf32>
    %244 = math.absf %243 : vector<16x128xf32>
    %cst_84 = arith.constant 2.000000e+00 : f32
    %245 = vector.broadcast %cst_84 : f32 to vector<16x128xf32>
    %246 = arith.cmpf ole, %244, %245 : vector<16x128xf32>
    %cst_85 = arith.constant 0.000000e+00 : f32
    %247 = vector.broadcast %cst_85 : f32 to vector<16x128xf32>
    %248 = arith.select %246, %234, %247 : vector<16x128xi1>, vector<16x128xf32>
    %249 = vector.broadcast %22 : vector<1x128xf32> to vector<16x128xf32>
    %250 = arith.mulf %140, %249 : vector<16x128xf32>
    %251 = vector.broadcast %30 : vector<1x128xf32> to vector<16x128xf32>
    %252 = arith.mulf %140, %251 : vector<16x128xf32>
    %253 = vector.broadcast %32 : vector<1x128xf32> to vector<16x128xf32>
    %254 = arith.mulf %140, %253 : vector<16x128xf32>
    %255 = tpu.concatenate %250, %252, %254 in 0 : vector<16x128xf32>, vector<16x128xf32>, vector<16x128xf32> -> vector<48x128xf32>
    %c0_86 = arith.constant 0 : index
    %c0_87 = arith.constant 0 : index
    %256 = vector.load %arg3[%c0_86, %c0_87] : memref<48x16xf32, #tpu.memory_space<vmem>>, vector<48x16xf32>
    %cst_88 = arith.constant dense<0.000000e+00> : vector<48x16xf32>
    %257 = tpu.matmul %255, %248, %cst_88 {dimension_numbers = #tpu.dot_dimension_numbers<[1], [1], [0], [0], [0, 0, 1, 0], [], []>} : vector<48x128xf32>, vector<16x128xf32>, vector<48x16xf32> -> vector<48x16xf32>
    %258 = arith.addf %256, %257 : vector<48x16xf32>
    %c0_89 = arith.constant 0 : index
    %c0_90 = arith.constant 0 : index
    %259 = vector.load %arg3[%c0_89, %c0_90] : memref<48x16xf32, #tpu.memory_space<vmem>>, vector<48x16xf32>
    tpu.vector_store %arg3[%c0_89, %c0_90], %258 {strides = array<i32>} : memref<48x16xf32, #tpu.memory_space<vmem>>, vector<48x16xf32>,
    %c0_i32_91 = arith.constant 0 : i32
    %260 = arith.cmpi eq, %arg0, %c0_i32_91 : i32
    %261 = arith.extui %260 : i1 to i32
    %c0_i32_92 = arith.constant 0 : i32
    %262 = arith.cmpi ne, %261, %c0_i32_92 : i32
    scf.if %262 {
      %c0_93 = arith.constant 0 : index
      %c0_94 = arith.constant 0 : index
      %263 = vector.load %arg3[%c0_93, %c0_94] : memref<48x16xf32, #tpu.memory_space<vmem>>, vector<16x16xf32>
      %c16 = arith.constant 16 : index
      %c0_95 = arith.constant 0 : index
      %264 = vector.load %arg3[%c16, %c0_95] : memref<48x16xf32, #tpu.memory_space<vmem>>, vector<16x16xf32>
      %c32 = arith.constant 32 : index
      %c0_96 = arith.constant 0 : index
      %265 = vector.load %arg3[%c32, %c0_96] : memref<48x16xf32, #tpu.memory_space<vmem>>, vector<16x16xf32>
      %266 = arith.addf %263, %264 : vector<16x16xf32>
      %267 = arith.addf %266, %265 : vector<16x16xf32>
      %268 = arith.addf %267, %265 : vector<16x16xf32>
      %269 = arith.subf %264, %263 : vector<16x16xf32>
      %cst_97 = arith.constant 0.000000e+00 : f32
      %270 = vector.broadcast %cst_97 : f32 to vector<16x16xf32>
      %271 = arith.maximumf %269, %270 : vector<16x16xf32>
      %272 = arith.addf %268, %271 : vector<16x16xf32>
      %cst_98 = arith.constant 9.99999996E-13 : f32
      %273 = vector.broadcast %cst_98 : f32 to vector<16x16xf32>
      %274 = arith.maximumf %267, %273 : vector<16x16xf32>
      %275 = tpu.reciprocal %274 {approx = true} : vector<16x16xf32> -> vector<16x16xf32>
      %cst_99 = arith.constant 6.250000e-02 : f32
      %276 = vector.broadcast %cst_99 : f32 to vector<16x16xf32>
      %277 = arith.mulf %276, %272 : vector<16x16xf32>
      %278 = arith.mulf %277, %275 : vector<16x16xf32>
      %c0_100 = arith.constant 0 : index
      %c0_101 = arith.constant 0 : index
      %279 = vector.load %arg2[%c0_100, %c0_101] : memref<16x16xf32, #tpu.memory_space<vmem>>, vector<16x16xf32>
      tpu.vector_store %arg2[%c0_100, %c0_101], %278 {strides = array<i32>} : memref<16x16xf32, #tpu.memory_space<vmem>>, vector<16x16xf32>,
    } else {
    }
    return
  }
  func.func @transform_0(%arg0: i32) -> (i32, i32) {
    %c0_i32 = arith.constant 0 : i32
    %c0_i32_0 = arith.constant 0 : i32
    return %c0_i32, %arg0 : i32, i32
  }
  func.func @transform_1(%arg0: i32) -> (i32, i32) {
    %c0_i32 = arith.constant 0 : i32
    %c0_i32_0 = arith.constant 0 : i32
    %c0_i32_1 = arith.constant 0 : i32
    return %c0_i32, %c0_i32_0 : i32, i32
  }
}

</mosaic_0001>

<bundles_post_ra>
// kernel: tpu_custom_call.1
= control target key start
LH: loop header
LB: loop body
LE: loop exit
PB: predicated region body
PF: predicated region fallthrough
CT: control target
= control target key end

     0   :  { %6 = vsyncpa [#allocation4], 0  ;;  %s885_s0 = inlined_call_operand.hbm [shape: f32[3,128], index: 0, kind: input, shape index: {}]   ;;  %s886_s1 = inlined_call_operand.hbm [shape: f32[16,16], index: 1, kind: output, shape index: {}]  }
   0x1   :  { %7 = vsyncpa [#allocation5], 0  ;;  %s717_s6 = smov [#allocation3]   ;;  %s669_s10 = scalar_lea.hbm %s885_s0, 64 }
   0x2   :  { %s14_s7 = sshll.u32 %s717_s6, 4  ;;  %p670_p0 = scmp.ne.s32.totalorder %s885_s0, %s669_s10  ;;  %s15_s7 = int_to_ptr.vmem [resolvable:$true] %s14_s7 }
   0x3   :  { %p673_p1 = scmp.lt.u32.totalorder %s669_s10, %s885_s0 }
   0x5   :  { %p675_p2 = pnand %p673_p1, %p670_p0 }
   0x7   :  { %678 = shalt.err (!%p675_p2)
}
   0x8   :  { %s679_s15 = scalar_lea.vmem %s15_s7, 64  ;;  %p684_p4 = scmp.lt.s32.totalorder %s15_s7, %s15_s7 }
   0x9   :  { %p680_p3 = scmp.ne.s32.totalorder %s15_s7, %s679_s15  ;;  %p685_p5 = scmp.lt.s32.totalorder %s679_s15, %s679_s15 }
   0xb   :  { %p686_p6 = por %p685_p5, %p684_p4 }
   0xd   :  { %p687_p7 = pnand %p686_p6, %p680_p3 }
   0xf   :  { %690 = shalt.err (!%p687_p7)
}
  0x10   :  { %17 = dma.hbm_to_vmem [thread:$0]  %s885_s0, 64, %s15_s7, [#allocation4]  }
  0x11   :  { %713 = dma.done.wait [#allocation4], 64  }
  0x12   :  { %714 = vsyncadd [#allocation4], 4294967232  ;;  %v46_v0 = vlaneseq  ;;  %vm25_vm0 = vcmask 130048   ;;  %v718_v1 = vmov 0.0   ;;  %v778_v10 = vld [vmem:[#allocation3] sm:$0x7] }
  0x13   :  { %26 = vst.msk [vmem:[#allocation2] sm:$0xff] %vm25_vm0, %v718_v1  ;;  %27 = vst.msk [vmem:[#allocation2 + $0x8] sm:$0xff] %vm25_vm0, %v718_v1  ;;  %vm33_vm8 = vcmp.ge.f32.partialorder %v778_v10, 0.0  ;;  %vm37_vm9 = vcmp.le.f32.partialorder %v778_v10, 1.0  ;;  %vm34_vm13 = vcmp.lt.f32.partialorder %v778_v10, 8.0  ;;  %s720_s0 = smov [#allocation6]  }
  0x14   :  { %28 = vst.msk [vmem:[#allocation2 + $0x10] sm:$0xff] %vm25_vm0, %v718_v1  ;;  %29 = vst.msk [vmem:[#allocation2 + $0x18] sm:$0xff] %vm25_vm0, %v718_v1  ;;  %v757_v2 = vshrl.u32 %v46_v0, 7  ;;  %v759_v3 = vand.u32 127, %v46_v0  ;;  %s562_s18 = sshll.u32 %s720_s0, 4  ;;  %s563_s18 = int_to_ptr.vmem [resolvable:$true] %s562_s18 }
  0x15   :  { %30 = vst.msk [vmem:[#allocation2 + $0x20] sm:$0xff] %vm25_vm0, %v718_v1  ;;  %31 = vst.msk [vmem:[#allocation2 + $0x28] sm:$0xff] %vm25_vm0, %v718_v1  ;;  %s691_s19 = scalar_lea.vmem %s563_s18, 256  ;;  %p696_p9 = scmp.lt.s32.totalorder %s563_s18, %s563_s18 }
  0x16   :  { %v762_v4 = vadd.s32 8, %v757_v2  ;;  %v765_v5 = vsub.s32 0, %v757_v2  ;;  %v129_v6 = vadd.s32 1, %v757_v2  ;;  %v769_v7 = vsub.s32 1, %v757_v2  ;;  %vm38_vm12 = vmand %vm33_vm8, %vm37_vm9  ;;  %p692_p8 = scmp.ne.s32.totalorder %s563_s18, %s691_s19  ;;  %p697_p10 = scmp.lt.s32.totalorder %s691_s19, %s691_s19 }
  0x17   :  { %v772_v8 = vcvt.s32.f32 %v757_v2  ;;  %vm35_vm15 = vmand %vm33_vm8, %vm34_vm13 }
  0x18   :  { %v775_v9 = vcvt.s32.f32 %v762_v4  ;;  %vm131_vm1 = vcmp.eq.s32.totalorder %v759_v3, %v129_v6  ;;  %v54_v12 = vrot.slane %v778_v10, %v765_v5  ;;  %v249_v13 = vrot.slane %v778_v10, %v769_v7  ;;  %p698_p11 = por %p697_p10, %p696_p9 }
  0x19   :  { %v781_v11 = vsel %vm131_vm1, 1.0, %v718_v1  ;;  %vm219_vm11 = vcmp.eq.f32.partialorder %v772_v8, 15.0  ;;  %vm40_vm1 = vcmp.ge.f32.partialorder %v778_v10, 2.0 }
  0x1a   :  { %602 = vmatprep.mubr.msk.f32.mxu1 %vm25_vm0, %v781_v11  ;;  %v55_v14 = vsub.f32 %v772_v8, %v54_v12  ;;  %v56_v15 = vsub.f32 %v775_v9, %v54_v12  ;;  %v250_v16 = vsub.f32 %v772_v8, %v249_v13  ;;  %v251_v17 = vsub.f32 %v775_v9, %v249_v13  ;;  %p699_p12 = pnand %p698_p11, %p692_p8 }
  0x1b   :  { %vm220_vm10 = vcmp.eq.f32.partialorder %v775_v9, 15.0 }
  0x1c   :  { %v793_v18 = vmul.f32 0.70710677, %v55_v14  ;;  %v795_v19 = vmul.f32 0.70710677, %v56_v15  ;;  %v797_v20 = vmul.f32 0.70710677, %v250_v16 }
  0x1d   :  { %v799_v21 = vmul.f32 0.70710677, %v251_v17 }
  0x1e   :  { %v63_v22 = vand.u32 2147483647, %v793_v18  ;;  %v64_v23 = vand.u32 2147483647, %v795_v19  ;;  %v258_v26 = vand.u32 2147483647, %v797_v20 }
  0x1f   :  { %v259_v27 = vand.u32 2147483647, %v799_v21  ;;  %vm59_vm2 = vcmp.ge.f32.partialorder %v793_v18, 0.0  ;;  %vm60_vm3 = vcmp.ge.f32.partialorder %v795_v19, 0.0  ;;  %vm254_vm4 = vcmp.ge.f32.partialorder %v797_v20, 0.0 }
  0x20   :  { %v65_v24 = vmul.f32 0.3275911, %v63_v22  ;;  %v66_v25 = vmul.f32 0.3275911, %v64_v23  ;;  %v260_v30 = vmul.f32 0.3275911, %v258_v26 }
  0x21   :  { %v261_v31 = vmul.f32 0.3275911, %v259_v27  ;;  %v89_v34 = vsub.f32 0.0, %v63_v22  ;;  %v90_v35 = vsub.f32 0.0, %v64_v23  ;;  %v284_v37 = vsub.f32 0.0, %v258_v26 }
  0x22   :  { %v67_v28 = vadd.f32 1.0, %v65_v24  ;;  %v68_v29 = vadd.f32 1.0, %v66_v25  ;;  %v262_v32 = vadd.f32 1.0, %v260_v30  ;;  %v285_v39 = vsub.f32 0.0, %v259_v27 }
  0x23   :  { %v263_v33 = vadd.f32 1.0, %v261_v31  ;;  %v91_v36 = vmul.f32 %v89_v34, %v63_v22  ;;  %v92_v38 = vmul.f32 %v90_v35, %v64_v23  ;;  %v286_v45 = vmul.f32 %v284_v37, %v258_v26 }
  0x24   :  { %645 = vrcp.f32 %v67_v28  ;;  %v287_v48 = vmul.f32 %v285_v39, %v259_v27  ;;  %v719_v37 = vmov -1.0   ;;  %vm255_vm5 = vcmp.ge.f32.partialorder %v799_v21, 0.0 }
  0x25   :  { %647 = vrcp.f32 %v68_v29  ;;  %v93_v44 = vmul.f32 1.442695, %v91_v36  ;;  %v95_v47 = vmul.f32 1.442695, %v92_v38  ;;  %v288_v56 = vmul.f32 1.442695, %v286_v45 }
  0x26   :  { %649 = vrcp.f32 %v262_v32  ;;  %v290_v59 = vmul.f32 1.442695, %v287_v48  ;;  %v61_v38 = vsel %vm59_vm2, 1.0, %v719_v37  ;;  %vm41_vm2 = vcmp.le.f32.partialorder %v778_v10, 3.0 }
  0x27   :  { %651 = vrcp.f32 %v263_v33 }
  0x28   :  { %653 = vpow2.f32 %v93_v44  ;;  %v62_v44 = vsel %vm60_vm3, 1.0, %v719_v37 }
  0x29   :  { %655 = vpow2.f32 %v95_v47 }
  0x2a   :  { %657 = vpow2.f32 %v288_v56 }
  0x2b   :  { %659 = vpow2.f32 %v290_v59 }
  0x2e   :  { %v646_v40 = vpop.eup %645 }
  0x2f   :  { %v648_v41 = vpop.eup %647  ;;  %v71_v42 = vmul.f32 1.0614054, %v646_v40 }
  0x30   :  { %v72_v43 = vmul.f32 1.0614054, %v648_v41  ;;  %v650_v49 = vpop.eup %649 }
  0x31   :  { %v73_v46 = vadd.f32 -1.4531521, %v71_v42  ;;  %v652_v51 = vpop.eup %651  ;;  %v266_v53 = vmul.f32 1.0614054, %v650_v49 }
  0x32   :  { %v74_v50 = vadd.f32 -1.4531521, %v72_v43  ;;  %v267_v55 = vmul.f32 1.0614054, %v652_v51  ;;  %v654_v26 = vpop.eup %653 }
  0x33   :  { %v75_v52 = vmul.f32 %v646_v40, %v73_v46  ;;  %v268_v58 = vadd.f32 -1.4531521, %v266_v53  ;;  %v656_v29 = vpop.eup %655  ;;  %v257_v53 = vsel %vm255_vm5, 1.0, %v719_v37  ;;  %vm42_vm5 = vmand %vm40_vm1, %vm41_vm2 }
  0x34   :  { %v76_v54 = vmul.f32 %v648_v41, %v74_v50  ;;  %v269_v61 = vadd.f32 -1.4531521, %v267_v55  ;;  %v658_v36 = vpop.eup %657  ;;  %v256_v50 = vsel %vm254_vm4, 1.0, %v719_v37 }
  0x35   :  { %v77_v57 = vadd.f32 1.4214138, %v75_v52  ;;  %v270_v63 = vmul.f32 %v650_v49, %v268_v58  ;;  %v660_v43 = vpop.eup %659 }
  0x36   :  { %v78_v60 = vadd.f32 1.4214138, %v76_v54  ;;  %v271_v6 = vmul.f32 %v652_v51, %v269_v61 }
  0x37   :  { %v79_v62 = vmul.f32 %v646_v40, %v77_v57  ;;  %v272_v13 = vadd.f32 1.4214138, %v270_v63 }
  0x38   :  { %v80_v0 = vmul.f32 %v648_v41, %v78_v60  ;;  %v273_v15 = vadd.f32 1.4214138, %v271_v6 }
  0x39   :  { %v81_v12 = vadd.f32 -0.28449672, %v79_v62  ;;  %v274_v17 = vmul.f32 %v650_v49, %v272_v13 }
  0x3a   :  { %v82_v14 = vadd.f32 -0.28449672, %v80_v0  ;;  %v275_v23 = vmul.f32 %v652_v51, %v273_v15 }
  0x3b   :  { %v83_v16 = vmul.f32 %v646_v40, %v81_v12  ;;  %v276_v25 = vadd.f32 -0.28449672, %v274_v17  ;;  %v231_v17 = vfloor.f32 %v778_v10 }
  0x3c   :  { %v84_v22 = vmul.f32 %v648_v41, %v82_v14  ;;  %v277_v28 = vadd.f32 -0.28449672, %v275_v23 }
  0x3d   :  { %v85_v24 = vadd.f32 0.2548296, %v83_v16  ;;  %v278_v31 = vmul.f32 %v650_v49, %v276_v25 }
  0x3e   :  { %v86_v27 = vadd.f32 0.2548296, %v84_v22  ;;  %v279_v33 = vmul.f32 %v652_v51, %v277_v28 }
  0x3f   :  { %v87_v30 = vmul.f32 %v646_v40, %v85_v24  ;;  %v280_v35 = vadd.f32 0.2548296, %v278_v31  ;;  %v130_v40 = vadd.s32 1, %v762_v4  ;;  %v232_v24 = vmax.f32 %v231_v17, 0.0 }
  0x40   :  { %v88_v32 = vmul.f32 %v648_v41, %v86_v27  ;;  %v281_v42 = vadd.f32 0.2548296, %v279_v33 }
  0x41   :  { %v97_v34 = vmul.f32 %v654_v26, %v87_v30  ;;  %v282_v46 = vmul.f32 %v650_v49, %v280_v35  ;;  %vm132_vm6 = vcmp.eq.s32.totalorder %v759_v3, %v130_v40  ;;  %v103_v3 = vsub.f32 16.0, %v778_v10 }
  0x42   :  { %v98_v39 = vmul.f32 %v656_v29, %v88_v32  ;;  %v283_v19 = vmul.f32 %v652_v51, %v281_v42  ;;  %v575_v21 = vsel %vm132_vm6, 1.0, %v718_v1  ;;  %v233_v26 = vmin.f32 %v232_v24, 15.0  ;;  %v418_v24 = vld [vmem:[#allocation2 + $0x28] sm:$0xff] }
  0x43   :  { %v99_v45 = vsub.f32 1.0, %v97_v34  ;;  %v292_v47 = vmul.f32 %v658_v36, %v282_v46  ;;  %v104_v56 = vmul.f32 0.70710677, %v103_v3  ;;  %v43_v10 = vsel %vm42_vm5, 1.0, %v718_v1 }
  0x44   :  { %v100_v18 = vsub.f32 1.0, %v98_v39  ;;  %v293_v52 = vmul.f32 %v660_v43, %v283_v19  ;;  %v237_v29 = vrot.slane %v233_v26, %v765_v5  ;;  %v386_v31 = vrot.slane %v233_v26, %v769_v7 }
  0x45   :  { %v810_v41 = vmul.f32 %v99_v45, %v61_v38  ;;  %v294_v54 = vsub.f32 1.0, %v292_v47  ;;  %v107_v57 = vand.u32 2147483647, %v104_v56  ;;  %vm105_vm7 = vcmp.ge.f32.partialorder %v104_v56, 0.0 }
  0x46   :  { %v812_v48 = vmul.f32 %v100_v18, %v62_v44  ;;  %v295_v20 = vsub.f32 1.0, %v293_v52  ;;  %v106_v28 = vsel %vm105_vm7, 1.0, %v719_v37  ;;  %v238_v32 = vsub.f32 %v772_v8, %v237_v29 }
  0x47   :  { %v817_v49 = vmul.f32 %v294_v54, %v256_v50  ;;  %v108_v58 = vmul.f32 0.3275911, %v107_v57  ;;  %v120_v0 = vsub.f32 0.0, %v107_v57  ;;  %v387_v34 = vsub.f32 %v772_v8, %v386_v31 }
  0x48   :  { %v625_v55 = vpack.c.bf16 %v812_v48, %v810_v41  ;;  %v819_v4 = vmul.f32 %v295_v20, %v257_v53  ;;  %v388_v35 = vsub.f32 %v775_v9, %v386_v31  ;;  %v240_v37 = vand.u32 2147483647, %v238_v32 }
  0x49   :  { %v109_v59 = vadd.f32 1.0, %v108_v58  ;;  %v121_v12 = vmul.f32 %v120_v0, %v107_v57  ;;  %v397_v38 = vsub.s32 2, %v757_v2  ;;  %v39_v45 = vsel %vm38_vm12, 1.0, %v718_v1  ;;  %v414_v0 = vld [vmem:[#allocation2 + $0x8] sm:$0xff] }
  0x4a   :  { %626 = vmatprep.subr.bf16.mxu1 %v625_v55  ;;  %v629_v51 = vpack.c.bf16 %v819_v4, %v817_v49  ;;  %v389_v46 = vand.u32 2147483647, %v387_v34  ;;  %v390_v18 = vand.u32 2147483647, %v388_v35  ;;  %vm242_vm14 = vcmp.le.f32.partialorder %v240_v37, 2.0 }
  0x4b   :  { %628 = vmatpush3.bf16.msra.mxu1 %v625_v55  ;;  %661 = vrcp.f32 %v109_v59  ;;  %v122_v14 = vmul.f32 1.442695, %v121_v12  ;;  %v398_v2 = vrot.slane %v39_v45, %v397_v38  ;;  %v239_v19 = vsub.f32 %v775_v9, %v237_v29 }
  0x4c   :  { %630 = vmatprep.subr.bf16.mxu1 %v629_v51  ;;  %vm391_vm3 = vcmp.le.f32.partialorder %v389_v46, 2.0  ;;  %vm392_vm4 = vcmp.le.f32.partialorder %v390_v18, 2.0  ;;  %v36_v8 = vsel %vm35_vm15, 1.0, %v718_v1 }
  0x4d   :  { %663 = vpow2.f32 %v122_v14  ;;  %vm634_vm6 = vmpackc.low %vm392_vm4, %vm391_vm3  ;;  %v44_v56 = vsub.f32 %v36_v8, %v39_v45 }
  0x4e   :  { %603 = vmatmul.mubr.msk.f32.vlgmr.msra.gmra.mrb[0].mxu1 %vm25_vm0, %v575_v21 }
  0x4f   :  { %632 = vmatpush3.bf16.msra.mxu1 %v629_v51  ;;  %609 = vmatprep.mubr.msk.f32.mxu1 %vm25_vm0, %v781_v11  ;;  %v45_v57 = vsub.f32 %v44_v56, %v43_v10 }
  0x52   :  { %610 = vmatmul.mubr.msk.f32.vlgmr.msra.gmra.mrb[2].mxu1 %vm25_vm0, %v575_v21 }
  0x55   :  { %v662_v60 = vpop.eup %661 }
  0x56   :  { %v111_v61 = vmul.f32 1.0614054, %v662_v60 }
  0x57   :  { %v664_v23 = vpop.eup %663 }
  0x58   :  { %v112_v62 = vadd.f32 -1.4531521, %v111_v61 }
  0x5a   :  { %v113_v63 = vmul.f32 %v662_v60, %v112_v62 }
  0x5c   :  { %v114_v6 = vadd.f32 1.4214138, %v113_v63 }
  0x5e   :  { %v115_v13 = vmul.f32 %v662_v60, %v114_v6  ;;  %v413_v6 = vld [vmem:[#allocation2] sm:$0xff] }
  0x60   :  { %v116_v15 = vadd.f32 -0.28449672, %v115_v13 }
  0x62   :  { %v117_v11 = vmul.f32 %v662_v60, %v116_v15  ;;  %v416_v15 = vld [vmem:[#allocation2 + $0x18] sm:$0xff] }
  0x64   :  { %v118_v16 = vadd.f32 0.2548296, %v117_v11  ;;  %v415_v11 = vld [vmem:[#allocation2 + $0x10] sm:$0xff] }
  0x66   :  { %v119_v22 = vmul.f32 %v662_v60, %v118_v16  ;;  %v410_v60 = vrot.slane %v45_v57, %v397_v38 }
  0x68   :  { %v124_v25 = vmul.f32 %v664_v23, %v119_v22 }
  0x6a   :  { %v125_v27 = vsub.f32 1.0, %v124_v25  ;;  %v417_v25 = vld [vmem:[#allocation2 + $0x20] sm:$0xff] }
  0x6c   :  { %v126_v30 = vmul.f32 %v125_v27, %v106_v28 }
  0x6e   :  { %v224_v33 = vrot.slane %v126_v30, %v765_v5  ;;  %v376_v42 = vrot.slane %v126_v30, %v769_v7 }
 0x121   :  { %v604_v36 = vpop.f32.mrb[0].mxu1 }
 0x122   :  { %v226_v5 = vsel %vm220_vm10, %v224_v33, %v604_v36  ;;  %v210_v39 = vpop.f32.mrb[1].mxu1 }
 0x123   :  { %v225_v43 = vsel %vm219_vm11, %v224_v33, %v210_v39  ;;  %v228_v9 = vsub.f32 %v226_v5, %v812_v48  ;;  %v404_v48 = vrot.slane %v43_v10, %v397_v38 }
 0x124   :  { %v227_v44 = vsub.f32 %v225_v43, %v810_v41 }
 0x125   :  { %v611_v40 = vpop.f32.mrb[2].mxu1  ;;  %v230_v3 = vmul.f32 0.5, %v228_v9 }
 0x126   :  { %v229_v47 = vmul.f32 0.5, %v227_v44  ;;  %v378_v7 = vsel %vm220_vm10, %v376_v42, %v611_v40  ;;  %v364_v50 = vpop.f32.mrb[3].mxu1 }
 0x127   :  { %v380_v52 = vsub.f32 %v378_v7, %v819_v4  ;;  %v377_v53 = vsel %vm219_vm11, %v376_v42, %v364_v50  ;;  %v241_v4 = vand.u32 2147483647, %v239_v19 }
 0x128   :  { %v379_v41 = vsub.f32 %v377_v53, %v817_v49  ;;  %v244_v54 = vsel %vm242_vm14, %v229_v47, 0.0 }
 0x129   :  { %v382_v55 = vmul.f32 0.5, %v380_v52  ;;  %v399_v20 = vmul.f32 %v398_v2, %v244_v54  ;;  %vm243_vm7 = vcmp.le.f32.partialorder %v241_v4, 2.0  ;;  %v405_v59 = vmul.f32 %v404_v48, %v244_v54 }
 0x12a   :  { %v381_v21 = vmul.f32 0.5, %v379_v41  ;;  %v245_v49 = vsel %vm243_vm7, %v230_v3, 0.0  ;;  %v411_v62 = vmul.f32 %v410_v60, %v244_v54 }
 0x12b   :  { %616 = vmatprep.mubr.f32.mxu0 %v399_v20  ;;  %v400_v58 = vmul.f32 %v398_v2, %v245_v49  ;;  %v406_v61 = vmul.f32 %v404_v48, %v245_v49  ;;  %v412_v63 = vmul.f32 %v410_v60, %v245_v49 }
 0x12c   :  { %v633_v51 = vpack.c.bf16 %v382_v55, %v381_v21 }
 0x12e   :  { %635 = vmatprep.subr.msk.bf16.mxu0 %vm634_vm6, %v633_v51 }
 0x12f   :  { %638 = vmatpush3.bf16.xpose.msk.msra.mxu0 %vm634_vm6, %v633_v51 }
 0x136   :  { %617 = vmatmul.mubr.f32.vlgmr.msra.gmra.mrb[0].mxu0 %v400_v58 }
 0x137   :  { %619 = vmatprep.mubr.f32.mxu0 %v405_v59 }
 0x13a   :  { %620 = vmatmul.mubr.f32.gmra.mrb[2].mxu0 %v406_v61 }
 0x13b   :  { %622 = vmatprep.mubr.f32.mxu0 %v411_v62 }
 0x13e   :  { %623 = vmatmul.mubr.f32.gmra.mrb[4].mxu0 %v412_v63 }
 0x209   :  { %v618_v12 = vpop.f32.mrb[0].mxu0 }
 0x20a   :  { %v515_v1 = vadd.f32 %v618_v12, %v414_v0  ;;  %v485_v13 = vpop.f32.mrb[1].mxu0 }
 0x20b   :  { %v514_v14 = vadd.f32 %v485_v13, %v413_v6 }
 0x20c   :  { %521 = vst.msk [vmem:[#allocation2 + $0x8] sm:$0xff] %vm25_vm0, %v515_v1 }
 0x20d   :  { %520 = vst.msk [vmem:[#allocation2] sm:$0xff] %vm25_vm0, %v514_v14  ;;  %v621_v16 = vpop.f32.mrb[2].mxu0 }
 0x20e   :  { %v517_v17 = vadd.f32 %v621_v16, %v416_v15  ;;  %v495_v22 = vpop.f32.mrb[3].mxu0 }
 0x20f   :  { %v516_v23 = vadd.f32 %v495_v22, %v415_v11 }
 0x210   :  { %523 = vst.msk [vmem:[#allocation2 + $0x18] sm:$0xff] %vm25_vm0, %v517_v17 }
 0x211   :  { %522 = vst.msk [vmem:[#allocation2 + $0x10] sm:$0xff] %vm25_vm0, %v516_v23  ;;  %v624_v26 = vpop.f32.mrb[4].mxu0 }
 0x212   :  { %v519_v27 = vadd.f32 %v624_v26, %v418_v24  ;;  %v505_v28 = vpop.f32.mrb[5].mxu0 }
 0x213   :  { %v518_v29 = vadd.f32 %v505_v28, %v417_v25  ;;  %v530_v32 = vld [vmem:[#allocation2 + $0x8] sm:$0xff] }
 0x214   :  { %525 = vst.msk [vmem:[#allocation2 + $0x28] sm:$0xff] %vm25_vm0, %v519_v27  ;;  %v529_v33 = vld [vmem:[#allocation2] sm:$0xff] }
 0x215   :  { %524 = vst.msk [vmem:[#allocation2 + $0x20] sm:$0xff] %vm25_vm0, %v518_v29 }
 0x217   :  { %v532_v30 = vld [vmem:[#allocation2 + $0x18] sm:$0xff] }
 0x218   :  { %v531_v31 = vld [vmem:[#allocation2 + $0x10] sm:$0xff]  ;;  %v536_v34 = vadd.f32 %v532_v30, %v530_v32  ;;  %v542_v42 = vsub.f32 %v532_v30, %v530_v32 }
 0x219   :  { %v535_v36 = vadd.f32 %v531_v31, %v529_v33  ;;  %v541_v44 = vsub.f32 %v531_v31, %v529_v33 }
 0x21a   :  { %v544_v18 = vmax.f32 %v542_v42, 0.0 }
 0x21b   :  { %v534_v35 = vld [vmem:[#allocation2 + $0x28] sm:$0xff]  ;;  %v543_v40 = vmax.f32 %v541_v44, 0.0 }
 0x21c   :  { %v533_v37 = vld [vmem:[#allocation2 + $0x20] sm:$0xff]  ;;  %v538_v38 = vadd.f32 %v536_v34, %v534_v35 }
 0x21d   :  { %v537_v5 = vadd.f32 %v535_v36, %v533_v37 }
 0x21e   :  { %v548_v39 = vmax.f32 %v538_v38, 1e-12  ;;  %v540_v45 = vadd.f32 %v538_v38, %v534_v35 }
 0x21f   :  { %v547_v43 = vmax.f32 %v537_v5, 1e-12  ;;  %v539_v46 = vadd.f32 %v537_v5, %v533_v37 }
 0x220   :  { %665 = vrcp.f32 %v548_v39  ;;  %v546_v2 = vadd.f32 %v544_v18, %v540_v45 }
 0x221   :  { %667 = vrcp.f32 %v547_v43  ;;  %v545_v19 = vadd.f32 %v543_v40, %v539_v46 }
 0x222   :  { %v552_v47 = vmul.f32 0.0625, %v546_v2 }
 0x223   :  { %v551_v50 = vmul.f32 0.0625, %v545_v19 }
 0x22a   :  { %v666_v7 = vpop.eup %665 }
 0x22b   :  { %v668_v52 = vpop.eup %667  ;;  %v554_v53 = vmul.f32 %v666_v7, %v552_v47 }
 0x22c   :  { %v553_v41 = vmul.f32 %v668_v52, %v551_v50 }
 0x22d   :  { %556 = vst.msk [vmem:[#allocation6 + $0x8] sm:$0xff] %vm25_vm0, %v554_v53 }
 0x22e   :  { %555 = vst.msk [vmem:[#allocation6] sm:$0xff] %vm25_vm0, %v553_v41 }
 0x22f   :  { %702 = shalt.err (!%p699_p12)
}
 0x230   :  { %s703_s22 = scalar_lea.hbm %s886_s1, 256 }
 0x231   :  { %p704_p13 = scmp.ne.s32.totalorder %s886_s1, %s703_s22  ;;  %p707_p0 = scmp.lt.u32.totalorder %s703_s22, %s886_s1 }
 0x233   :  { %p709_p1 = pnand %p707_p0, %p704_p13 }
 0x235   :  { %712 = shalt.err (!%p709_p1)
}
 0x236   :  { %s721_s27 = smov 128   ;;  %s722_s28 = smov 8  }
 0x237   :  { %568 = dma.vmem_to_hbm [thread:$0]  %s563_s18, 256, %s886_s1, [#allocation5], %s721_s27, %s721_s27, %s722_s28  }
 0x238   :  { %715 = dma.done.wait [#allocation5], 256  }
 0x239   :  { %716 = vsyncadd [#allocation5], 4294967040 }
 0x23a   :  { %572 = vsyncpa [#allocation4], 1 }
 0x23b   :  { %573 = vsyncpa [#allocation5], 1 }

</bundles_post_ra>
